<compile_context>
chip_gen: v7x
topology: tpu7x:2x2x1
jax: 0.10.0
libtpu: 0.0.40
codegen_flags: <defaults>
</compile_context>

<pallas_src>
import functools

import jax
import jax.numpy as jnp
from jax.experimental import pallas as pl
from jax.experimental.pallas import tpu as pltpu

_LANE = 128
_SUBLANE = 8


def _round_up(x: int, m: int) -> int:
    return (x + m - 1) // m * m


def _sublane_pack(dtype) -> int:
    """Rows per fully packed sublane tile: 8 (f32), 16 (bf16), 32 (int8/fp8)."""
    itemsize = jnp.dtype(dtype).itemsize
    return _SUBLANE * max(1, 4 // itemsize)


def _lowest(dtype):
    if jnp.issubdtype(dtype, jnp.floating):
        return jnp.array(-jnp.inf, dtype)
    return jnp.array(jnp.iinfo(dtype).min, dtype)


def _vmem_budget():
    """Returns (tile budget bytes, vmem_limit_bytes), generation-aware."""
    cap = None
    try:
        cap = getattr(pltpu.get_tpu_info(), "vmem_capacity_bytes", None)
    except Exception:
        cap = None
    if not cap or cap <= 0:
        cap = 64 * 1024 * 1024          # conservative (v7x-sized) default
    if cap >= 96 * 1024 * 1024:         # v5e / v6e: 128 MiB physical VMEM
        return 72 * 1024 * 1024, 96 * 1024 * 1024
    # v7x: 64 MiB physical VMEM per TensorCore
    return 40 * 1024 * 1024, 48 * 1024 * 1024


def _choose_tiles(rows, cols, in_itemsize, out_itemsize, acc_itemsize, pack, budget):
    """Pick (tile_r, tile_c, num_k) using lane/sublane-padded VMEM accounting."""
    padded_cols = _round_up(cols, _LANE)
    # Padded footprints:
    #   input : double-buffered, tile_r * round_up(tile_c, 128) * itemsize each
    #   output: double-buffered (tile_r, 1) block pads to 128 lanes per row
    #   acc   : (tile_r, 1) scratch pads to 128 lanes (chunked path only)
    out_bytes_per_row = 2 * _LANE * out_itemsize

    def _rows_for(per_row_bytes):
        tile_r = max(pack, (budget // per_row_bytes // pack) * pack)
        if rows > pack:
            # Keep >= 2 row tiles so v7x's two TensorCores both get work
            # (one extra ~0.35us grid step on single-TC chips: negligible).
            tile_r = min(tile_r, _round_up(pl.cdiv(rows, 2), pack))
        if tile_r >= rows:
            tile_r = rows               # full-dim block: any size is legal
        return tile_r

    # Preferred: reduce the whole row (H*W) in one chunk -> no scratch, no k axis.
    per_row_single = 2 * padded_cols * in_itemsize + out_bytes_per_row
    if per_row_single * pack <= budget:
        return _rows_for(per_row_single), cols, 1

    # Huge H*W: chunk the reduction along the lane axis.
    acc_bytes_per_row = _LANE * acc_itemsize
    max_c = (budget - pack * (out_bytes_per_row + acc_bytes_per_row)) // (2 * pack * in_itemsize)
    max_c = max(_LANE, (max_c // _LANE) * _LANE)
    tile_c = None
    c = max_c
    while c >= _LANE:                   # prefer an exact divisor (no tail mask)
        if cols % c == 0:
            tile_c = c
            break
        c -= _LANE
    if tile_c is None:
        tile_c = max_c                  # non-dividing: kernel masks the tail chunk
    num_k = pl.cdiv(cols, tile_c)
    per_row = (2 * _round_up(tile_c, _LANE) * in_itemsize
               + out_bytes_per_row + acc_bytes_per_row)
    return _rows_for(per_row), tile_c, num_k


def _pool_kernel_single(x_ref, o_ref, *, pool_mode: str, inv_count: float):
    # x_ref: (tile_r, cols) lane-dense chunk; o_ref: (tile_r, 1) output block.
    x = x_ref[...]
    if pool_mode == "avg":
        # Fused f32 accumulation (no full-tile f32 materialization).
        s = jnp.sum(x, axis=1, keepdims=True, dtype=jnp.float32)
        o_ref[...] = (s * inv_count).astype(o_ref.dtype)
    else:
        o_ref[...] = jnp.max(x, axis=1, keepdims=True).astype(o_ref.dtype)


def _pool_kernel_chunked(x_ref, o_ref, acc_ref, *, pool_mode: str,
                         inv_count: float, cols: int, tile_c: int,
                         need_mask: bool):
    # x_ref: (tile_r, tile_c); o_ref: (tile_r, 1) resident across the k axis;
    # acc_ref: (tile_r, 1) accumulator (f32 for avg, native dtype for max).
    k = pl.program_id(1)

    @pl.when(k == 0)
    def _init():
        if pool_mode == "avg":
            acc_ref[...] = jnp.zeros_like(acc_ref)
        else:
            acc_ref[...] = jnp.full(acc_ref.shape, _lowest(acc_ref.dtype),
                                    acc_ref.dtype)

    x = x_ref[...]
    if need_mask:
        col = k * tile_c + jax.lax.broadcasted_iota(jnp.int32, x.shape, 1)
        valid = col < cols
        fill = jnp.zeros((), x.dtype) if pool_mode == "avg" else _lowest(x.dtype)
        x = jnp.where(valid, x, fill)

    if pool_mode == "avg":
        acc_ref[...] += jnp.sum(x, axis=1, keepdims=True, dtype=jnp.float32)
    else:
        acc_ref[...] = jnp.maximum(acc_ref[...],
                                   jnp.max(x, axis=1, keepdims=True))

    @pl.when(k == pl.num_programs(1) - 1)
    def _finalize():
        if pool_mode == "avg":
            o_ref[...] = (acc_ref[...] * inv_count).astype(o_ref.dtype)
        else:
            o_ref[...] = acc_ref[...].astype(o_ref.dtype)


def global_pool_flat(x: jax.Array, pool_mode: str = "avg", *,
                     vmem_budget_bytes: int | None = None) -> jax.Array:
    """Pallas equivalent of GlobalPoolFlat.forward: (N, C, H, W) -> (N, C)."""
    assert x.ndim == 4, "GlobalPoolFlat expects a 4-D NCHW tensor"
    n, c, h, w = x.shape
    rows, cols = n * c, h * w

    # Free, contiguous view: rows = N*C on sublanes, H*W on the lane axis.
    x2 = x.reshape(rows, cols)

    in_itemsize = jnp.dtype(x.dtype).itemsize
    out_dtype = x.dtype
    out_itemsize = jnp.dtype(out_dtype).itemsize
    acc_dtype = jnp.float32 if pool_mode == "avg" else x.dtype
    acc_itemsize = jnp.dtype(acc_dtype).itemsize
    pack = _sublane_pack(x.dtype)

    budget, vmem_limit = _vmem_budget()
    if vmem_budget_bytes is not None:   # test hook: force the chunked path
        budget = vmem_budget_bytes

    tile_r, tile_c, num_k = _choose_tiles(rows, cols, in_itemsize, out_itemsize,
                                          acc_itemsize, pack, budget)
    inv_count = 1.0 / float(cols)
    cost = pl.CostEstimate(
        flops=rows * cols, transcendentals=0,
        bytes_accessed=rows * cols * in_itemsize + rows * out_itemsize)

    if num_k == 1:
        # Common case: whole H*W reduction in one shot, no scratch, 1-D grid.
        kernel = functools.partial(_pool_kernel_single, pool_mode=pool_mode,
                                   inv_count=inv_count)
        out = pl.pallas_call(
            kernel,
            out_shape=jax.ShapeDtypeStruct((rows, 1), out_dtype),
            grid_spec=pltpu.PrefetchScalarGridSpec(
                num_scalar_prefetch=0,
                grid=(pl.cdiv(rows, tile_r),),
                in_specs=[pl.BlockSpec((tile_r, cols), lambda i: (i, 0))],
                out_specs=pl.BlockSpec((tile_r, 1), lambda i: (i, 0)),
            ),
            compiler_params=pltpu.CompilerParams(
                dimension_semantics=("parallel",),
                vmem_limit_bytes=vmem_limit,
            ),
            cost_estimate=cost,
        )(x2)
    else:
        # Huge H*W: chunked reduction with resident accumulator.
        need_mask = (cols % tile_c) != 0
        kernel = functools.partial(_pool_kernel_chunked, pool_mode=pool_mode,
                                   inv_count=inv_count, cols=cols,
                                   tile_c=tile_c, need_mask=need_mask)
        out = pl.pallas_call(
            kernel,
            out_shape=jax.ShapeDtypeStruct((rows, 1), out_dtype),
            grid_spec=pltpu.PrefetchScalarGridSpec(
                num_scalar_prefetch=0,
                grid=(pl.cdiv(rows, tile_r), num_k),
                in_specs=[pl.BlockSpec((tile_r, tile_c), lambda i, k: (i, k))],
                out_specs=pl.BlockSpec((tile_r, 1), lambda i, k: (i, 0)),
                scratch_shapes=[pltpu.VMEM((tile_r, 1), acc_dtype)],
            ),
            compiler_params=pltpu.CompilerParams(
                dimension_semantics=("parallel", "arbitrary"),
                vmem_limit_bytes=vmem_limit,
            ),
            cost_estimate=cost,
        )(x2)

    return out.reshape(n, c)


if __name__ == "__main__":
    key = jax.random.PRNGKey(0)

    # Shape consistent with the module's forward: N=2, C=4, H=W=16 (f32).
    x = jax.random.normal(key, (2, 4, 16, 16), dtype=jnp.float32)
    out_avg = jax.block_until_ready(global_pool_flat(x, pool_mode="avg"))
    out_max = jax.block_until_ready(global_pool_flat(x, pool_mode="max"))
    ref_avg = jnp.mean(x, axis=(2, 3))
    ref_max = jnp.max(x, axis=(2, 3))
    assert out_avg.shape == (2, 4) and out_max.shape == (2, 4)
    assert jnp.allclose(out_avg, ref_avg, atol=1e-5, rtol=1e-5)
    assert jnp.allclose(out_max, ref_max, atol=1e-5, rtol=1e-5)

    # Non-multiple-of-8 rows / non-multiple-of-128 cols + bf16 (packed-sublane
    # rounding, native-dtype max, fused-f32 avg).
    x2 = jax.random.normal(jax.random.PRNGKey(1), (3, 5, 7, 7),
                           dtype=jnp.float32).astype(jnp.bfloat16)
    out_max2 = jax.block_until_ready(global_pool_flat(x2, pool_mode="max"))
    out_avg2 = jax.block_until_ready(global_pool_flat(x2, pool_mode="avg"))
    ref_max2 = jnp.max(x2, axis=(2, 3))
    ref_avg2 = jnp.mean(x2.astype(jnp.float32), axis=(2, 3)).astype(jnp.bfloat16)
    assert out_max2.shape == (3, 5) and out_avg2.shape == (3, 5)
    assert jnp.array_equal(out_max2, ref_max2)
    assert jnp.allclose(out_avg2.astype(jnp.float32),
                        ref_avg2.astype(jnp.float32), atol=1e-2, rtol=1e-2)

    # Force the chunked + tail-mask path (tiny VMEM budget, cols=259 has no
    # 128-aligned divisor) to keep the large-H*W fallback exercised.
    x3 = jax.random.normal(jax.random.PRNGKey(2), (2, 3, 7, 37),
                           dtype=jnp.float32)
    out_avg3 = jax.block_until_ready(
        global_pool_flat(x3, pool_mode="avg", vmem_budget_bytes=16 * 1024))
    out_max3 = jax.block_until_ready(
        global_pool_flat(x3, pool_mode="max", vmem_budget_bytes=16 * 1024))
    ref_avg3 = jnp.mean(x3, axis=(2, 3))
    ref_max3 = jnp.max(x3, axis=(2, 3))
    assert jnp.allclose(out_avg3, ref_avg3, atol=1e-5, rtol=1e-5)
    assert jnp.allclose(out_max3, ref_max3, atol=1e-5, rtol=1e-5)

    print("KERNEL_OK")
</pallas_src>

<mosaic_0001>
module attributes {stable_mosaic.version = 11 : i64} {
  func.func @_pool_kernel_single(%arg0: i32, %arg1: memref<8x256xf32, #tpu.memory_space<vmem>>, %arg2: memref<8x1xf32, #tpu.memory_space<vmem>>) attributes {dimension_semantics = [#tpu.dimension_semantics<parallel>], iteration_bounds = array<i64: 1>, scalar_prefetch = 0 : i64, scratch_operands = 0 : i64, tpu.core_type = #tpu.core_type<tc>, window_params = [{transform_indices = @transform_0, window_bounds = array<i64: 8, 256>}, {transform_indices = @transform_1, window_bounds = array<i64: 8, 1>}]} {
    %c0 = arith.constant 0 : index
    %c0_0 = arith.constant 0 : index
    %0 = vector.load %arg1[%c0, %c0_0] : memref<8x256xf32, #tpu.memory_space<vmem>>, vector<8x256xf32>
    %cst = arith.constant dense<0.000000e+00> : vector<8xf32>
    %1 = vector.multi_reduction <add>, %0, %cst [1] : vector<8x256xf32> to vector<8xf32>
    %2 = vector.shape_cast %1 : vector<8xf32> to vector<8x1xf32>
    %cst_1 = arith.constant 3.906250e-03 : f32
    %3 = vector.broadcast %cst_1 : f32 to vector<8x1xf32>
    %4 = arith.mulf %2, %3 : vector<8x1xf32>
    %c0_2 = arith.constant 0 : index
    %c0_3 = arith.constant 0 : index
    %5 = vector.load %arg2[%c0_2, %c0_3] : memref<8x1xf32, #tpu.memory_space<vmem>>, vector<8x1xf32>
    tpu.vector_store %arg2[%c0_2, %c0_3], %4 {strides = array<i32>} : memref<8x1xf32, #tpu.memory_space<vmem>>, vector<8x1xf32>,
    return
  }
  func.func @transform_0(%arg0: i32) -> (i32, i32) {
    %c0_i32 = arith.constant 0 : i32
    %c0_i32_0 = arith.constant 0 : i32
    return %arg0, %c0_i32 : i32, i32
  }
  func.func @transform_1(%arg0: i32) -> (i32, i32) {
    %c0_i32 = arith.constant 0 : i32
    %c0_i32_0 = arith.constant 0 : i32
    return %arg0, %c0_i32 : i32, i32
  }
}

</mosaic_0001>

<bundles_post_ra>
// kernel: tpu_custom_call.1
= control target key start
LH: loop header
LB: loop body
LE: loop exit
PB: predicated region body
PF: predicated region fallthrough
CT: control target
= control target key end

     0   :  { %6 = vsyncpa [#allocation3], 0  ;;  %s58_s6 = smov [#allocation2]   ;;  %s84_s0 = inlined_call_operand.hbm [shape: f32[8,256], index: 0, kind: input, shape index: {}]   ;;  %s85_s1 = inlined_call_operand.vmem [shape: f32[8,1], index: 1, kind: output, shape index: {}]  }
   0x1   :  { %s13_s7 = sshll.u32 %s58_s6, 4  ;;  %s34_s10 = scalar_lea.hbm %s84_s0, 256  ;;  %s14_s7 = int_to_ptr.vmem [resolvable:$true] %s13_s7 }
   0x2   :  { %p35_p0 = scmp.ne.s32.totalorder %s84_s0, %s34_s10  ;;  %p38_p1 = scmp.lt.u32.totalorder %s34_s10, %s84_s0 }
   0x4   :  { %p40_p2 = pnand %p38_p1, %p35_p0 }
   0x6   :  { %43 = shalt.err (!%p40_p2)
}
   0x7   :  { %s44_s15 = scalar_lea.vmem %s14_s7, 256  ;;  %p49_p4 = scmp.lt.s32.totalorder %s14_s7, %s14_s7 }
   0x8   :  { %p45_p3 = scmp.ne.s32.totalorder %s14_s7, %s44_s15  ;;  %p50_p5 = scmp.lt.s32.totalorder %s44_s15, %s44_s15 }
   0xa   :  { %p51_p6 = por %p50_p5, %p49_p4 }
   0xc   :  { %p52_p7 = pnand %p51_p6, %p45_p3 }
   0xe   :  { %55 = shalt.err (!%p52_p7)
}
   0xf   :  { %16 = dma.hbm_to_vmem [thread:$0]  %s84_s0, 256, %s14_s7, [#allocation3]  }
  0x10   :  { %56 = dma.done.wait [#allocation3], 256  }
  0x11   :  { %57 = vsyncadd [#allocation3], 4294967040  ;;  %v20_v0 = vld [vmem:[#allocation2] sm:$0xff]  ;;  %v21_v1 = vld [vmem:[#allocation2 + $0x8] sm:$0xff]  ;;  %vm26_vm0 = vcmask 7168  }
  0x12   :  { %v22_v2 = vadd.f32 %v21_v1, %v20_v0 }
  0x14   :  { %23 = vadd.xlane.f32.xlu0 %v22_v2 }
  0xa1   :  { %v24_v3 = vpop.xlane.xlu0 %23 }
  0xa2   :  { %v25_v4 = vmul.f32 0.00390625, %v24_v3 }
  0xa4   :  { %27 = vst.msk [vmem:[%s85_s1] sm:$0xff] %vm26_vm0, %v25_v4 }
  0xa5   :  { %32 = vsyncpa [#allocation3], 1 }

</bundles_post_ra>
